<compile_context>
chip_gen: v6e
topology: v6e:2x2x1
jax: 0.10.0
libtpu: 0.0.40
codegen_flags: <defaults>
</compile_context>

<pallas_src>
import functools

import jax
import jax.numpy as jnp
from jax import lax
from jax.experimental import pallas as pl
from jax.experimental.pallas import tpu as pltpu


def _convblock_kernel(x_ref, w_ref, b_ref, scale_ref, shift_ref, o_ref, *,
                      ksize, height, tile_h):
    """One output row-tile: relu(scale*x + shift) convolved with banded weights.

    x_ref:     (H + 2p, L) f32   H-padded activation input, lane-dense (L = N*W*C)
    w_ref:     (K, L, L)   f32   block-banded expanded conv weights
    b_ref:     (1, L)      f32   conv bias, tiled per lane
    scale_ref: (1, L)      f32   folded BN scale (1.0 when batch_norm=False)
    shift_ref: (1, L)      f32   folded BN shift (0.0 when batch_norm=False)
    o_ref:     (TH, L)           output row tile
    """
    K = ksize
    p = (K - 1) // 2
    TH = tile_h
    L = o_ref.shape[1]

    r0 = pl.multiple_of(pl.program_id(0) * TH, TH)            # first output row
    row = lax.broadcasted_iota(jnp.int32, (TH, L), 0) + r0    # global output row

    scale = scale_ref[...]
    shift = shift_ref[...]
    acc = jnp.zeros((TH, L), jnp.float32) + b_ref[...]        # bias, broadcast over rows

    for dy in range(K):
        # Padded-input rows [r0+dy, r0+dy+TH) correspond to original rows (row + dy - p).
        xw = x_ref[pl.ds(r0 + dy, TH), :].astype(jnp.float32)
        act = jnp.maximum(xw * scale + shift, 0.0)
        # Zero rows whose source lies outside the image (keeps the zero-pad
        # semantics exact even when the folded BN shift is nonzero).
        src = row + (dy - p)
        act = jnp.where((src >= 0) & (src < height), act, 0.0)
        # Single full-depth (L=128) contraction per dy; f32 accumulate.
        acc = acc + jnp.dot(act, w_ref[dy], preferred_element_type=jnp.float32)

    o_ref[...] = acc.astype(o_ref.dtype)                      # lane-dense (TH, L) store


def _expand_conv_weights(weight_hwio, n_batch, width, channels):
    """(K, K, Cin, Cout) -> (K, L, L) block-banded lane matrices, L = N*W*C.

    Wband[dy, l_in, l_out] = weight[dy, dx, c_in, c_out] with dx = w_in - w_out + p
    when 0 <= dx < K and the lanes belong to the same batch element, else 0.
    """
    K = weight_hwio.shape[0]
    C = channels
    p = (K - 1) // 2
    L = n_batch * width * C

    lane = jnp.arange(L)
    n = lane // (width * C)
    w = (lane // C) % width
    c = lane % C

    dx = w[:, None] - w[None, :] + p                              # (L_in, L_out)
    valid = (n[:, None] == n[None, :]) & (dx >= 0) & (dx < K)
    dx_c = jnp.clip(dx, 0, K - 1)
    ci = jnp.broadcast_to(c[:, None], (L, L))
    co = jnp.broadcast_to(c[None, :], (L, L))

    w_big = weight_hwio.astype(jnp.float32)[:, dx_c, ci, co]      # (K, L, L)
    return jnp.where(valid[None, :, :], w_big, 0.0)


def conv_block_pallas(x_nchw, weight_hwio, bias, bn_scale, bn_shift, *, ksize):
    """x_nchw: (N, C, H, W); weight_hwio: (K, K, Cin, Cout); bias/scale/shift: (C,)."""
    N, C, H, W = x_nchw.shape
    K = ksize
    assert K in (3, 5, 7) and K % 2 == 1, "ConvBlock allows odd ksize in {3,5,7}"
    assert weight_hwio.shape == (K, K, C, C), "ConvBlock has Cin == Cout == num_channels"
    p = (K - 1) // 2
    L = N * W * C

    # Layout plumbing (wrapper side): NCHW -> (H, N*W*C) lane-dense slab,
    # zero-padded by p rows on each side of H so every dy tap is an in-bounds
    # window load inside the kernel.
    x_rows = jnp.transpose(x_nchw, (2, 0, 3, 1)).reshape(H, L).astype(jnp.float32)
    x_pad = jnp.pad(x_rows, ((p, p), (0, 0)))

    w_big = _expand_conv_weights(weight_hwio, N, W, C)                  # (K, L, L)
    b_vec = jnp.tile(bias.astype(jnp.float32), N * W)[None, :]          # (1, L)
    sc_vec = jnp.tile(bn_scale.astype(jnp.float32), N * W)[None, :]
    sh_vec = jnp.tile(bn_shift.astype(jnp.float32), N * W)[None, :]

    tile_h = 8 if H % 8 == 0 else H
    grid = (H // tile_h,)

    kernel = functools.partial(_convblock_kernel, ksize=K, height=H, tile_h=tile_h)

    cost = pl.CostEstimate(
        flops=int(2 * N * H * W * K * K * C * C),
        transcendentals=0,
        bytes_accessed=int(4 * (x_pad.size + w_big.size + 3 * L + H * L)),
    )

    out_rows = pl.pallas_call(
        kernel,
        out_shape=jax.ShapeDtypeStruct((H, L), x_nchw.dtype),
        grid=grid,
        in_specs=[
            pl.BlockSpec((H + 2 * p, L), lambda i: (0, 0)),    # resident padded input
            pl.BlockSpec((K, L, L), lambda i: (0, 0, 0)),      # resident banded weights
            pl.BlockSpec((1, L), lambda i: (0, 0)),            # bias
            pl.BlockSpec((1, L), lambda i: (0, 0)),            # BN scale
            pl.BlockSpec((1, L), lambda i: (0, 0)),            # BN shift
        ],
        out_specs=pl.BlockSpec((tile_h, L), lambda i: (i, 0)),
        compiler_params=pltpu.CompilerParams(
            dimension_semantics=("parallel",)),
        cost_estimate=cost,
    )(x_pad, w_big, b_vec, sc_vec, sh_vec)

    # (H, N*W*C) -> (H, N, W, C) -> NCHW
    return out_rows.reshape(H, N, W, C).transpose(1, 3, 0, 2)


def conv_block_reference(x_nchw, weight_hwio, bias, bn_scale, bn_shift, *, ksize):
    """Pure-JAX reference of ConvBlock.forward (eval-mode BN folded into scale/shift)."""
    p = (ksize - 1) // 2
    x = jnp.transpose(x_nchw, (0, 2, 3, 1))
    x = jnp.maximum(x * bn_scale + bn_shift, 0.0)
    y = lax.conv_general_dilated(
        x, weight_hwio, window_strides=(1, 1), padding=[(p, p), (p, p)],
        dimension_numbers=("NHWC", "HWIO", "NHWC"))
    y = y + bias
    return jnp.transpose(y, (0, 3, 1, 2))


if __name__ == "__main__":
    # ConvBlock(num_channels=4, ksize=3, batch_norm=False)
    N, C, H, W = 2, 4, 16, 16
    K = 3

    key = jax.random.PRNGKey(0)
    kx, kw, kb = jax.random.split(key, 3)

    x = jax.random.normal(kx, (N, C, H, W), dtype=jnp.float32)

    # Deterministic parameter init (uniform, PyTorch-like fan-in bound).
    fan_in = C * K * K
    bound = 1.0 / (fan_in ** 0.5)
    weight_hwio = jax.random.uniform(kw, (K, K, C, C), jnp.float32,
                                     minval=-bound, maxval=bound)
    bias = jax.random.uniform(kb, (C,), jnp.float32, minval=-bound, maxval=bound)

    # batch_norm=False -> identity scale/shift (eval-mode BN would fold here).
    bn_scale = jnp.ones((C,), jnp.float32)
    bn_shift = jnp.zeros((C,), jnp.float32)

    y = conv_block_pallas(x, weight_hwio, bias, bn_scale, bn_shift, ksize=K)
    y = jax.block_until_ready(y)

    y_ref = conv_block_reference(x, weight_hwio, bias, bn_scale, bn_shift, ksize=K)
    assert y.shape == (N, C, H, W)
    assert jnp.allclose(y, y_ref, atol=1e-4, rtol=1e-4), "mismatch vs reference"

    print("KERNEL_OK")
</pallas_src>

<mosaic_0001>
module attributes {stable_mosaic.version = 11 : i64} {
  func.func @_convblock_kernel(%arg0: i32, %arg1: memref<18x128xf32, #tpu.memory_space<vmem>>, %arg2: memref<3x128x128xf32, #tpu.memory_space<vmem>>, %arg3: memref<1x128xf32, #tpu.memory_space<vmem>>, %arg4: memref<1x128xf32, #tpu.memory_space<vmem>>, %arg5: memref<1x128xf32, #tpu.memory_space<vmem>>, %arg6: memref<8x128xf32, #tpu.memory_space<vmem>>) attributes {dimension_semantics = [#tpu.dimension_semantics<parallel>], iteration_bounds = array<i64: 2>, scalar_prefetch = 0 : i64, scratch_operands = 0 : i64, tpu.core_type = #tpu.core_type<tc>, window_params = [{pipeline_mode = #tpu.pipeline_mode<synchronous>, transform_indices = @transform_0, window_bounds = array<i64: 18, 128>}, {pipeline_mode = #tpu.pipeline_mode<synchronous>, transform_indices = @transform_1, window_bounds = array<i64: 3, 128, 128>}, {pipeline_mode = #tpu.pipeline_mode<synchronous>, transform_indices = @transform_2, window_bounds = array<i64: 1, 128>}, {pipeline_mode = #tpu.pipeline_mode<synchronous>, transform_indices = @transform_3, window_bounds = array<i64: 1, 128>}, {pipeline_mode = #tpu.pipeline_mode<synchronous>, transform_indices = @transform_4, window_bounds = array<i64: 1, 128>}, {transform_indices = @transform_5, window_bounds = array<i64: 8, 128>}]} {
    %c8_i32 = arith.constant 8 : i32
    %0 = arith.muli %arg0, %c8_i32 : i32
    %1 = tpu.assume_multiple %0, 8 : i32
    %2 = tpu.iota {dimensions = array<i32: 0>} : vector<8x128xi32>
    %3 = vector.broadcast %1 : i32 to vector<8x128xi32>
    %4 = arith.addi %2, %3 : vector<8x128xi32>
    %c0 = arith.constant 0 : index
    %c0_0 = arith.constant 0 : index
    %5 = vector.load %arg4[%c0, %c0_0] : memref<1x128xf32, #tpu.memory_space<vmem>>, vector<1x128xf32>
    %c0_1 = arith.constant 0 : index
    %c0_2 = arith.constant 0 : index
    %6 = vector.load %arg5[%c0_1, %c0_2] : memref<1x128xf32, #tpu.memory_space<vmem>>, vector<1x128xf32>
    %cst = arith.constant 0.000000e+00 : f32
    %7 = vector.broadcast %cst : f32 to vector<8x128xf32>
    %c0_3 = arith.constant 0 : index
    %c0_4 = arith.constant 0 : index
    %8 = vector.load %arg3[%c0_3, %c0_4] : memref<1x128xf32, #tpu.memory_space<vmem>>, vector<1x128xf32>
    %9 = vector.broadcast %8 : vector<1x128xf32> to vector<8x128xf32>
    %10 = arith.addf %7, %9 : vector<8x128xf32>
    %c0_i32 = arith.constant 0 : i32
    %11 = arith.addi %1, %c0_i32 : i32
    %12 = arith.index_cast %11 : i32 to index
    %c0_5 = arith.constant 0 : index
    %13 = vector.load %arg1[%12, %c0_5] : memref<18x128xf32, #tpu.memory_space<vmem>>, vector<8x128xf32>
    %14 = vector.broadcast %5 : vector<1x128xf32> to vector<8x128xf32>
    %15 = arith.mulf %13, %14 : vector<8x128xf32>
    %16 = vector.broadcast %6 : vector<1x128xf32> to vector<8x128xf32>
    %17 = arith.addf %15, %16 : vector<8x128xf32>
    %cst_6 = arith.constant 0.000000e+00 : f32
    %18 = vector.broadcast %cst_6 : f32 to vector<8x128xf32>
    %19 = arith.maximumf %17, %18 : vector<8x128xf32>
    %c-1_i32 = arith.constant -1 : i32
    %20 = vector.broadcast %c-1_i32 : i32 to vector<8x128xi32>
    %21 = arith.addi %4, %20 : vector<8x128xi32>
    %c0_i32_7 = arith.constant 0 : i32
    %22 = vector.broadcast %c0_i32_7 : i32 to vector<8x128xi32>
    %23 = arith.cmpi sge, %21, %22 : vector<8x128xi32>
    %c16_i32 = arith.constant 16 : i32
    %24 = vector.broadcast %c16_i32 : i32 to vector<8x128xi32>
    %25 = arith.cmpi slt, %21, %24 : vector<8x128xi32>
    %26 = arith.andi %23, %25 : vector<8x128xi1>
    %cst_8 = arith.constant 0.000000e+00 : f32
    %27 = vector.broadcast %cst_8 : f32 to vector<8x128xf32>
    %28 = arith.select %26, %19, %27 : vector<8x128xi1>, vector<8x128xf32>
    %c0_9 = arith.constant 0 : index
    %c0_10 = arith.constant 0 : index
    %c0_11 = arith.constant 0 : index
    %29 = vector.load %arg2[%c0_9, %c0_10, %c0_11] : memref<3x128x128xf32, #tpu.memory_space<vmem>>, vector<1x128x128xf32>
    %30 = vector.shape_cast %29 : vector<1x128x128xf32> to vector<128x128xf32>
    %cst_12 = arith.constant dense<0.000000e+00> : vector<8x128xf32>
    %31 = tpu.matmul %28, %30, %cst_12 {dimension_numbers = #tpu.dot_dimension_numbers<[1], [0], [0], [1], [0, 0, 1, 1], [], []>} : vector<8x128xf32>, vector<128x128xf32>, vector<8x128xf32> -> vector<8x128xf32>
    %32 = arith.addf %10, %31 : vector<8x128xf32>
    %c1_i32 = arith.constant 1 : i32
    %33 = arith.addi %1, %c1_i32 : i32
    %34 = arith.index_cast %33 : i32 to index
    %c0_13 = arith.constant 0 : index
    %35 = vector.load %arg1[%34, %c0_13] : memref<18x128xf32, #tpu.memory_space<vmem>>, vector<8x128xf32>
    %36 = vector.broadcast %5 : vector<1x128xf32> to vector<8x128xf32>
    %37 = arith.mulf %35, %36 : vector<8x128xf32>
    %38 = vector.broadcast %6 : vector<1x128xf32> to vector<8x128xf32>
    %39 = arith.addf %37, %38 : vector<8x128xf32>
    %cst_14 = arith.constant 0.000000e+00 : f32
    %40 = vector.broadcast %cst_14 : f32 to vector<8x128xf32>
    %41 = arith.maximumf %39, %40 : vector<8x128xf32>
    %c0_i32_15 = arith.constant 0 : i32
    %42 = vector.broadcast %c0_i32_15 : i32 to vector<8x128xi32>
    %43 = arith.addi %4, %42 : vector<8x128xi32>
    %c0_i32_16 = arith.constant 0 : i32
    %44 = vector.broadcast %c0_i32_16 : i32 to vector<8x128xi32>
    %45 = arith.cmpi sge, %43, %44 : vector<8x128xi32>
    %c16_i32_17 = arith.constant 16 : i32
    %46 = vector.broadcast %c16_i32_17 : i32 to vector<8x128xi32>
    %47 = arith.cmpi slt, %43, %46 : vector<8x128xi32>
    %48 = arith.andi %45, %47 : vector<8x128xi1>
    %cst_18 = arith.constant 0.000000e+00 : f32
    %49 = vector.broadcast %cst_18 : f32 to vector<8x128xf32>
    %50 = arith.select %48, %41, %49 : vector<8x128xi1>, vector<8x128xf32>
    %c1 = arith.constant 1 : index
    %c0_19 = arith.constant 0 : index
    %c0_20 = arith.constant 0 : index
    %51 = vector.load %arg2[%c1, %c0_19, %c0_20] : memref<3x128x128xf32, #tpu.memory_space<vmem>>, vector<1x128x128xf32>
    %52 = vector.shape_cast %51 : vector<1x128x128xf32> to vector<128x128xf32>
    %cst_21 = arith.constant dense<0.000000e+00> : vector<8x128xf32>
    %53 = tpu.matmul %50, %52, %cst_21 {dimension_numbers = #tpu.dot_dimension_numbers<[1], [0], [0], [1], [0, 0, 1, 1], [], []>} : vector<8x128xf32>, vector<128x128xf32>, vector<8x128xf32> -> vector<8x128xf32>
    %54 = arith.addf %32, %53 : vector<8x128xf32>
    %c2_i32 = arith.constant 2 : i32
    %55 = arith.addi %1, %c2_i32 : i32
    %56 = arith.index_cast %55 : i32 to index
    %c0_22 = arith.constant 0 : index
    %57 = vector.load %arg1[%56, %c0_22] : memref<18x128xf32, #tpu.memory_space<vmem>>, vector<8x128xf32>
    %58 = vector.broadcast %5 : vector<1x128xf32> to vector<8x128xf32>
    %59 = arith.mulf %57, %58 : vector<8x128xf32>
    %60 = vector.broadcast %6 : vector<1x128xf32> to vector<8x128xf32>
    %61 = arith.addf %59, %60 : vector<8x128xf32>
    %cst_23 = arith.constant 0.000000e+00 : f32
    %62 = vector.broadcast %cst_23 : f32 to vector<8x128xf32>
    %63 = arith.maximumf %61, %62 : vector<8x128xf32>
    %c1_i32_24 = arith.constant 1 : i32
    %64 = vector.broadcast %c1_i32_24 : i32 to vector<8x128xi32>
    %65 = arith.addi %4, %64 : vector<8x128xi32>
    %c0_i32_25 = arith.constant 0 : i32
    %66 = vector.broadcast %c0_i32_25 : i32 to vector<8x128xi32>
    %67 = arith.cmpi sge, %65, %66 : vector<8x128xi32>
    %c16_i32_26 = arith.constant 16 : i32
    %68 = vector.broadcast %c16_i32_26 : i32 to vector<8x128xi32>
    %69 = arith.cmpi slt, %65, %68 : vector<8x128xi32>
    %70 = arith.andi %67, %69 : vector<8x128xi1>
    %cst_27 = arith.constant 0.000000e+00 : f32
    %71 = vector.broadcast %cst_27 : f32 to vector<8x128xf32>
    %72 = arith.select %70, %63, %71 : vector<8x128xi1>, vector<8x128xf32>
    %c2 = arith.constant 2 : index
    %c0_28 = arith.constant 0 : index
    %c0_29 = arith.constant 0 : index
    %73 = vector.load %arg2[%c2, %c0_28, %c0_29] : memref<3x128x128xf32, #tpu.memory_space<vmem>>, vector<1x128x128xf32>
    %74 = vector.shape_cast %73 : vector<1x128x128xf32> to vector<128x128xf32>
    %cst_30 = arith.constant dense<0.000000e+00> : vector<8x128xf32>
    %75 = tpu.matmul %72, %74, %cst_30 {dimension_numbers = #tpu.dot_dimension_numbers<[1], [0], [0], [1], [0, 0, 1, 1], [], []>} : vector<8x128xf32>, vector<128x128xf32>, vector<8x128xf32> -> vector<8x128xf32>
    %76 = arith.addf %54, %75 : vector<8x128xf32>
    %c0_31 = arith.constant 0 : index
    %c0_32 = arith.constant 0 : index
    %77 = vector.load %arg6[%c0_31, %c0_32] : memref<8x128xf32, #tpu.memory_space<vmem>>, vector<8x128xf32>
    tpu.vector_store %arg6[%c0_31, %c0_32], %76 {strides = array<i32>} : memref<8x128xf32, #tpu.memory_space<vmem>>, vector<8x128xf32>,
    return
  }
  func.func @transform_0(%arg0: i32) -> (i32, i32) {
    %c0_i32 = arith.constant 0 : i32
    %c0_i32_0 = arith.constant 0 : i32
    %c0_i32_1 = arith.constant 0 : i32
    return %c0_i32, %c0_i32_0 : i32, i32
  }
  func.func @transform_1(%arg0: i32) -> (i32, i32, i32) {
    %c0_i32 = arith.constant 0 : i32
    %c0_i32_0 = arith.constant 0 : i32
    %c0_i32_1 = arith.constant 0 : i32
    %c0_i32_2 = arith.constant 0 : i32
    return %c0_i32, %c0_i32_0, %c0_i32_1 : i32, i32, i32
  }
  func.func @transform_2(%arg0: i32) -> (i32, i32) {
    %c0_i32 = arith.constant 0 : i32
    %c0_i32_0 = arith.constant 0 : i32
    %c0_i32_1 = arith.constant 0 : i32
    return %c0_i32, %c0_i32_0 : i32, i32
  }
  func.func @transform_3(%arg0: i32) -> (i32, i32) {
    %c0_i32 = arith.constant 0 : i32
    %c0_i32_0 = arith.constant 0 : i32
    %c0_i32_1 = arith.constant 0 : i32
    return %c0_i32, %c0_i32_0 : i32, i32
  }
  func.func @transform_4(%arg0: i32) -> (i32, i32) {
    %c0_i32 = arith.constant 0 : i32
    %c0_i32_0 = arith.constant 0 : i32
    %c0_i32_1 = arith.constant 0 : i32
    return %c0_i32, %c0_i32_0 : i32, i32
  }
  func.func @transform_5(%arg0: i32) -> (i32, i32) {
    %c0_i32 = arith.constant 0 : i32
    %c0_i32_0 = arith.constant 0 : i32
    return %arg0, %c0_i32 : i32, i32
  }
}

</mosaic_0001>

<bundles_post_ra>
// kernel: tpu_custom_call.1
= control target key start
LH: loop header
LB: loop body
LE: loop exit
PB: predicated region body
PF: predicated region fallthrough
CT: control target
= control target key end

     0   :  { %10 = vsyncpa [#allocation3], 0  ;;  %s1262_s0 = inlined_call_operand.hbm [shape: f32[18,128], index: 0, kind: input, shape index: {}]   ;;  %s1263_s1 = inlined_call_operand.hbm [shape: f32[3,128,128], index: 1, kind: input, shape index: {}]   ;;  %s1264_s2 = inlined_call_operand.vmem [shape: f32[1,128], index: 2, kind: input, shape index: {}]   ;;  %s1265_s3 = inlined_call_operand.vmem [shape: f32[1,128], index: 3, kind: input, shape index: {}]   ;;  %s1266_s4 = inlined_call_operand.vmem [shape: f32[1,128], index: 4, kind: input, shape index: {}]   ;;  %s1267_s5 = inlined_call_operand.hbm [shape: f32[16,128], index: 5, kind: output, shape index: {}]  }
   0x1   :  { %11 = vsyncpa [#allocation6], 0 }
   0x2   :  { %12 = vsyncpa [#allocation4], 0 }
   0x3   :  { %14 = vsyncpa [#allocation4 + $0x1], 0  ;;  %s1048_s18 = smov 0   ;;  %s1050_s19 = smov 0  }
   0x4   :  { %s1052_s20 = smov 0   ;;  %s1054_s21 = smov 0  }
   0x5 LB: > { %s1069_s22 = sadd.s32 4294967295, %s1009_s21   ;;  %s646_s23 = sadd.s32 4294967294, %s1009_s21   ;;  %s1009_s21 = sphi %s1054_s21, %s1281_s21   ;;  %s1005_s20 = sphi %s1052_s20, %s1280_s20   ;;  %s1001_s19 = sphi %s1050_s19, %s1279_s19   ;;  %s997_s18 = sphi %s1048_s18, %s1278_s18  }
   0x6   : > { %s1073_s24 = sadd.s32 1, %s1009_s21   ;;  %s132_s25 = sadd.s32 1, %s1005_s20 }
   0x7   : > { %s129_s26 = ssub.s32 %s1009_s21, %s1073_s24  ;;  %p142_p0 = scmp.ne.s32.totalorder %s1005_s20, %s1001_s19 }
   0x8   : > { %p130_p1 = scmp.eq.s32.totalorder %s129_s26, 0  ;;  %p143_p2 = scmp.eq.s32.totalorder %s1069_s22, 1 }
   0x9   : > { %p148_p3 = scmp.ne.s32.totalorder %s1001_s19, %s997_s18  ;;  %p149_p4 = scmp.eq.s32.totalorder %s646_s23, 1 }
   0xa   : > { %s1084_s27 = scalar_select %p130_p1, %s1005_s20, %s132_s25  }
   0xb   : > { %p1086_p5 = por %p143_p2, %p142_p0  ;;  %p1090_p6 = por %p149_p4, %p148_p3 }
   0xc   : > { %p647_p7 = scmp.ge.s32.totalorder %s1009_s21, 1  ;;  %p156_p8 = scmp.lt.s32.totalorder %s1009_s21, 3 }
   0xd   : > { %s1270_s29 = scalar_select %p1090_p6, 1, 0 }
   0xe   : > { %p1268_p9 = scmp.eq.s32.totalorder %s1069_s22, 0  ;;  %p1097_p10 = pnand %p647_p7, %p156_p8 }
   0xf   : > { %s1011_s6 = smov [#allocation2]   ;;  %s1012_s9 = smov [#allocation5]  }
  0x10   : > { %s168_s7 = sshll.u32 %s1011_s6, 4  ;;  %p835_p11 = pneg %p1097_p10  ;;  %s169_s7 = int_to_ptr.vmem [resolvable:$true] %s168_s7 }
  0x11   : > { %s181_s10 = sshll.u32 %s1012_s9, 4  ;;  %s900_s11 = scalar_lea.vmem %s169_s7, 384  ;;  %s182_s10 = int_to_ptr.vmem [resolvable:$true] %s181_s10 }
  0x12   : > { %p1105_p12 = pnand %p1268_p9, %p835_p11  ;;  %p901_p0 = scmp.ne.s32.totalorder %s169_s7, %s900_s11 }
  0x13   : > { %p908_p3 = scmp.lt.s32.totalorder %s169_s7, %s169_s7  ;;  %p909_p4 = scmp.lt.s32.totalorder %s900_s11, %s900_s11 }
  0x14   : > { %p891_p13 = pneg %p1105_p12 }
  0x15   : > { %p910_p7 = por %p909_p4, %p908_p3 }
  0x16   : > { %p903_p1 = pnand %p901_p0, %p891_p13 }
  0x18   : > { %p904_p2 = pneg %p903_p1 }
  0x1a   : > { %p911_p8 = pnand %p910_p7, %p904_p2 }
  0x1c   : > { %914 = shalt.err (!%p911_p8)
}
  0x1d   : > { %s1013_s12 = smov 128   ;;  %s1014_s13 = smov 8  }
  0x1e   : > { %838 = dma.hbm_to_vmem [thread:$0]  (!%p1105_p12), %s1262_s0, 384, %s169_s7, [#allocation3], %s1013_s12, %s1013_s12, %s1014_s13  }
  0x1f   : > { %s926_s16 = scalar_lea.vmem %s182_s10, 6144  ;;  %p934_p9 = scmp.lt.s32.totalorder %s182_s10, %s182_s10 }
  0x20   : > { %p927_p11 = scmp.ne.s32.totalorder %s182_s10, %s926_s16  ;;  %p935_p6 = scmp.lt.s32.totalorder %s926_s16, %s926_s16 }
  0x22   : > { %p929_p0 = pnand %p927_p11, %p891_p13  ;;  %p936_p3 = por %p935_p6, %p934_p9 }
  0x24   : > { %p930_p1 = pneg %p929_p0 }
  0x26   : > { %p937_p2 = pnand %p936_p3, %p930_p1 }
  0x28   : > { %940 = shalt.err (!%p937_p2)
}
  0x29   : > { %841 = dma.hbm_to_vmem [thread:$0]  (!%p1105_p12), %s1263_s1, 6144, %s182_s10, [#allocation6], %s1013_s12, %s1013_s12, %s1014_s13  }
  0x2a   : > { %206 = sbr.rel (%p1097_p10) target bundleno = 325 (0x145), region = 40  ;;  %p1273_p4 = scmp.eq.s32.totalorder (!%p1097_p10), %s1069_s22, 0 }
  0x2f   : > { %984 = dma.done.wait (%p1273_p4), [#allocation3], 384   ;;  %p1274_p13 = pmov %p1273_p4 }
  0x30   : > { %p1275_p7 = pmov %p1273_p4 }
  0x31   : > { %986 = vsyncadd (%p1274_p13), [#allocation3], 4294966912 }
  0x32   : > { %988 = dma.done.wait (%p1275_p7), [#allocation6], 6144   ;;  %p1276_p6 = pmov %p1273_p4 }
  0x33   : > { %v1015_v0 = vmov 0.0   ;;  %vm1016_vm0 = vmmov 0   ;;  %v285_v1 = vld [vmem:[#allocation5 + $0x78] sm:$0xff]  ;;  %v284_v2 = vld [vmem:[#allocation5 + $0x70] sm:$0xff]  ;;  %v283_v5 = vld [vmem:[#allocation5 + $0x68] sm:$0xff]  ;;  %v234_v15 = vlaneseq  ;;  %s654_s25 = sshll.u32 %s1069_s22, 3 }
  0x34   : > { %990 = vsyncadd (%p1276_p6), [#allocation6], 4294961152  ;;  %720 = vmatprep.subr.mxu0 %v1015_v0  ;;  %755 = vmatprep.subr.mxu1 %v1015_v0  ;;  %v383_v3 = vld [vmem:[#allocation5 + $0xf8] sm:$0xff]  ;;  %v382_v4 = vld [vmem:[#allocation5 + $0xf0] sm:$0xff]  ;;  %v236_v21 = vstv %s654_s25  ;;  %s1165_s6 = scalar_lea.vmem [#allocation2], %s654_s25  ;;  %s230_s9 = sand.u32 1, %s1001_s19  }
  0x35   : > { %752 = vmatprep.mubr.msk.f32.mxu0 %vm1016_vm0, %v1015_v0  ;;  %787 = vmatprep.mubr.msk.f32.mxu1 %vm1016_vm0, %v1015_v0  ;;  %v381_v6 = vld [vmem:[#allocation5 + $0xe8] sm:$0xff]  ;;  %v282_v7 = vld [vmem:[#allocation5 + $0x60] sm:$0xff]  ;;  %v281_v9 = vld [vmem:[#allocation5 + $0x58] sm:$0xff]  ;;  %v235_v20 = vshrl.u32 %v234_v15, 7  ;;  %s653_s12 = sshll.u32 %s230_s9, 3  ;;  %s666_s13 = sshll.u32 %s1069_s22, 7 }
  0x36   : > { %721 = vmatpush3.msra.mxu0 %v285_v1  ;;  %756 = vmatpush3.msra.mxu1 %v383_v3  ;;  %v380_v8 = vld [vmem:[#allocation5 + $0xe0] sm:$0xff]  ;;  %v379_v10 = vld [vmem:[#allocation5 + $0xd8] sm:$0xff]  ;;  %v280_v11 = vld [vmem:[#allocation5 + $0x50] sm:$0xff]  ;;  %s232_s14 = scalar_lea.vmem [#allocation7], %s653_s12  ;;  %s1227_s23 = scalar_lea.hbm %s1267_s5, %s666_s13 }
  0x37   : > { %722 = vmatprep.subr.mxu0 %v1015_v0  ;;  %757 = vmatprep.subr.mxu1 %v1015_v0  ;;  %v378_v12 = vld [vmem:[#allocation5 + $0xd0] sm:$0xff]  ;;  %v279_v13 = vld [vmem:[#allocation5 + $0x48] sm:$0xff]  ;;  %v278_v16 = vld [vmem:[#allocation5 + $0x40] sm:$0xff]  ;;  %v1170_v28 = vadd.s32 %v236_v21, %v235_v20  ;;  %s569_s15 = sshll.u32 %s232_s14, 4  ;;  %s556_s25 = scalar_lea.sflag [#allocation4], %s230_s9  ;;  %s570_s15 = int_to_ptr.vmem [resolvable:$true] %s569_s15 }
  0x38   : > { %723 = vmatpush3.msra.mxu0 %v284_v2  ;;  %758 = vmatpush3.msra.mxu1 %v382_v4  ;;  %v377_v14 = vld [vmem:[#allocation5 + $0xc8] sm:$0xff]  ;;  %v376_v17 = vld [vmem:[#allocation5 + $0xc0] sm:$0xff]  ;;  %v277_v18 = vld [vmem:[#allocation5 + $0x38] sm:$0xff]  ;;  %s941_s26 = scalar_lea.vmem %s570_s15, 128  ;;  %s1017_s22 = smov [#allocation7]  }
  0x39   : > { %724 = vmatprep.subr.mxu0 %v1015_v0  ;;  %759 = vmatprep.subr.mxu1 %v1015_v0  ;;  %v375_v19 = vld [vmem:[#allocation5 + $0xb8] sm:$0xff]  ;;  %v276_v22 = vld [vmem:[#allocation5 + $0x30] sm:$0xff]  ;;  %v1163_v24 = vld [vmem:[%s1265_s3] ss:$0 sm:$0xff]  ;;  %v265_v37 = vadd.s32 4294967295, %v1170_v28  ;;  %vm363_vm3 = vcmp.ge.s32.totalorder %v1170_v28, 0  ;;  %p942_p9 = scmp.ne.s32.totalorder %s570_s15, %s941_s26 }
  0x3a   : > { %725 = vmatpush3.msra.mxu0 %v283_v5  ;;  %760 = vmatpush3.msra.mxu1 %v381_v6  ;;  %v374_v23 = vld [vmem:[#allocation5 + $0xb0] sm:$0xff]  ;;  %v249_v25 = vld [vmem:[%s1165_s6] sm:$0xff]  ;;  %v274_v30 = vld [vmem:[#allocation5 + $0x20] sm:$0xff]  ;;  %vm364_vm4 = vcmp.lt.s32.totalorder %v1170_v28, 16  ;;  %v461_v63 = vadd.s32 1, %v1170_v28  ;;  %s945_s30 = sshll.u32 %s1017_s22, 4  ;;  %s946_s30 = int_to_ptr.vmem [resolvable:$false] %s945_s30 }
  0x3b   : > { %726 = vmatprep.subr.mxu0 %v1015_v0  ;;  %761 = vmatprep.subr.mxu1 %v1015_v0  ;;  %v275_v26 = vld [vmem:[#allocation5 + $0x28] sm:$0xff]  ;;  %v372_v31 = vld [vmem:[#allocation5 + $0xa0] sm:$0xff]  ;;  %v256_v32 = vmul.f32 %v1163_v24, %v249_v25  ;;  %v273_v35 = vld [vmem:[#allocation5 + $0x18] sm:$0xff]  ;;  %vm266_vm1 = vcmp.ge.s32.totalorder %v265_v37, 0  ;;  %vm267_vm2 = vcmp.lt.s32.totalorder %v265_v37, 16  ;;  %p943_p10 = pnand %p942_p9, %p1086_p5  ;;  %p948_p8 = scmp.lt.s32.totalorder %s570_s15, %s946_s30 }
  0x3c   : > { %727 = vmatpush3.msra.mxu0 %v282_v7  ;;  %762 = vmatpush3.msra.mxu1 %v380_v8  ;;  %v373_v27 = vld [vmem:[#allocation5 + $0xa8] sm:$0xff]  ;;  %v371_v36 = vld [vmem:[#allocation5 + $0x98] sm:$0xff]  ;;  %v272_v38 = vld [vmem:[#allocation5 + $0x10] sm:$0xff]  ;;  %vm462_vm7 = vcmp.ge.s32.totalorder %v461_v63, 0  ;;  %vm463_vm8 = vcmp.lt.s32.totalorder %v461_v63, 16 }
  0x3d   : > { %728 = vmatprep.subr.mxu0 %v1015_v0  ;;  %763 = vmatprep.subr.mxu1 %v1015_v0  ;;  %v660_v29 = vld [vmem:[%s1165_s6 + $0x1] sm:$0xff]  ;;  %v1179_v33 = vld [vmem:[%s1266_s4] ss:$0 sm:$0xff]  ;;  %v270_v44 = vld [vmem:[#allocation5] sm:$0xff]  ;;  %p944_p12 = pneg %p943_p10 }
  0x3e   : > { %729 = vmatpush3.msra.mxu0 %v281_v9  ;;  %764 = vmatpush3.msra.mxu1 %v379_v10  ;;  %v360_v34 = vmul.f32 %v660_v29, %v1163_v24  ;;  %v370_v39 = vld [vmem:[#allocation5 + $0x90] sm:$0xff]  ;;  %v263_v40 = vadd.f32 %v1179_v33, %v256_v32  ;;  %v271_v42 = vld [vmem:[#allocation5 + $0x8] sm:$0xff]  ;;  %v368_v46 = vld [vmem:[#allocation5 + $0x80] sm:$0xff] }
  0x3f   : > { %730 = vmatprep.subr.mxu0 %v1015_v0  ;;  %765 = vmatprep.subr.mxu1 %v1015_v0  ;;  %v369_v43 = vld [vmem:[#allocation5 + $0x88] sm:$0xff]  ;;  %vm268_vm5 = vmand %vm266_vm1, %vm267_vm2  ;;  %v482_v48 = vld [vmem:[#allocation5 + $0x178] sm:$0xff] }
  0x40   : > { %731 = vmatpush3.msra.mxu0 %v280_v11  ;;  %766 = vmatpush3.msra.mxu1 %v378_v12  ;;  %v361_v41 = vadd.f32 %v1179_v33, %v360_v34  ;;  %v264_v45 = vmax.f32 %v263_v40, 0.0  ;;  %vm365_vm6 = vmand %vm363_vm3, %vm364_vm4  ;;  %v481_v49 = vld [vmem:[#allocation5 + $0x170] sm:$0xff]  ;;  %v480_v50 = vld [vmem:[#allocation5 + $0x168] sm:$0xff] }
  0x41   : > { %732 = vmatprep.subr.mxu0 %v1015_v0  ;;  %767 = vmatprep.subr.mxu1 %v1015_v0  ;;  %v479_v51 = vld [vmem:[#allocation5 + $0x160] sm:$0xff]  ;;  %v478_v52 = vld [vmem:[#allocation5 + $0x158] sm:$0xff]  ;;  %v477_v53 = vld [vmem:[#allocation5 + $0x150] sm:$0xff] }
  0x42   : > { %733 = vmatpush3.msra.mxu0 %v279_v13  ;;  %768 = vmatpush3.msra.mxu1 %v377_v14  ;;  %v362_v47 = vmax.f32 %v361_v41, 0.0  ;;  %v476_v54 = vld [vmem:[#allocation5 + $0x148] sm:$0xff]  ;;  %v475_v55 = vld [vmem:[#allocation5 + $0x140] sm:$0xff]  ;;  %v474_v56 = vld [vmem:[#allocation5 + $0x138] sm:$0xff] }
  0x43   : > { %734 = vmatprep.subr.mxu0 %v1015_v0  ;;  %769 = vmatprep.subr.mxu1 %v1015_v0  ;;  %v473_v57 = vld [vmem:[#allocation5 + $0x130] sm:$0xff]  ;;  %v472_v59 = vld [vmem:[#allocation5 + $0x128] sm:$0xff]  ;;  %v471_v60 = vld [vmem:[#allocation5 + $0x120] sm:$0xff] }
  0x44   : > { %735 = vmatpush3.msra.mxu0 %v278_v16  ;;  %770 = vmatpush3.msra.mxu1 %v376_v17  ;;  %v663_v58 = vld [vmem:[%s1165_s6 + $0x2] sm:$0xff]  ;;  %v470_v62 = vld [vmem:[#allocation5 + $0x118] sm:$0xff]  ;;  %v467_v4 = vld [vmem:[#allocation5 + $0x100] sm:$0xff]  ;;  %s947_s6 = scalar_lea.vmem %s946_s30, 256 }
  0x45   : > { %736 = vmatprep.subr.mxu0 %v1015_v0  ;;  %771 = vmatprep.subr.mxu1 %v1015_v0  ;;  %v458_v61 = vmul.f32 %v663_v58, %v1163_v24  ;;  %v469_v1 = vld [vmem:[#allocation5 + $0x110] sm:$0xff]  ;;  %v468_v3 = vld [vmem:[#allocation5 + $0x108] sm:$0xff]  ;;  %vm464_vm9 = vmand %vm462_vm7, %vm463_vm8  ;;  %p949_p11 = scmp.lt.s32.totalorder %s947_s6, %s941_s26 }
  0x46   : > { %737 = vmatpush3.msra.mxu0 %v277_v18  ;;  %772 = vmatpush3.msra.mxu1 %v375_v19  ;;  %v655_v10 = vld [vmem:[%s1264_s2] ss:$0 sm:$0xff] }
  0x47   : > { %738 = vmatprep.subr.mxu0 %v1015_v0  ;;  %773 = vmatprep.subr.mxu1 %v1015_v0  ;;  %v459_v2 = vadd.f32 %v1179_v33, %v458_v61  ;;  %p950_p0 = por %p949_p11, %p948_p8 }
  0x48   : > { %739 = vmatpush3.msra.mxu0 %v276_v22  ;;  %774 = vmatpush3.msra.mxu1 %v374_v23 }
  0x49   : > { %740 = vmatprep.subr.mxu0 %v1015_v0  ;;  %775 = vmatprep.subr.mxu1 %v1015_v0  ;;  %v460_v5 = vmax.f32 %v459_v2, 0.0  ;;  %p951_p1 = pnand %p950_p0, %p944_p12 }
  0x4a   : > { %741 = vmatpush3.msra.mxu0 %v275_v26  ;;  %776 = vmatpush3.msra.mxu1 %v373_v27 }
  0x4b   : > { %742 = vmatprep.subr.mxu0 %v1015_v0  ;;  %777 = vmatprep.subr.mxu1 %v1015_v0 }
  0x4c   : > { %743 = vmatpush3.msra.mxu0 %v274_v30  ;;  %778 = vmatpush3.msra.mxu1 %v372_v31 }
  0x4d   : > { %744 = vmatprep.subr.mxu0 %v1015_v0  ;;  %779 = vmatprep.subr.mxu1 %v1015_v0 }
  0x4e   : > { %745 = vmatpush3.msra.mxu0 %v273_v35  ;;  %780 = vmatpush3.msra.mxu1 %v371_v36 }
  0x4f   : > { %746 = vmatprep.subr.mxu0 %v1015_v0  ;;  %781 = vmatprep.subr.mxu1 %v1015_v0 }
  0x50   : > { %747 = vmatpush3.msra.mxu0 %v272_v38  ;;  %782 = vmatpush3.msra.mxu1 %v370_v39 }
  0x51   : > { %748 = vmatprep.subr.mxu0 %v1015_v0  ;;  %783 = vmatprep.subr.mxu1 %v1015_v0 }
  0x52   : > { %749 = vmatpush3.msra.mxu0 %v271_v42  ;;  %784 = vmatpush3.msra.mxu1 %v369_v43 }
  0x53   : > { %750 = vmatprep.subr.mxu0 %v1015_v0  ;;  %785 = vmatprep.subr.mxu1 %v1015_v0 }
  0x54   : > { %751 = vmatpush3.msra.mxu0 %v270_v44  ;;  %786 = vmatpush3.msra.mxu1 %v368_v46 }
  0x55   : > { %753 = vmatmul.mubr.msk.f32.vlgmr.msra.gmra.mxu0 %vm268_vm5, %v264_v45  ;;  %790 = vmatprep.subr.mxu0 %v1015_v0 }
  0x56   : > { %791 = vmatpush3.msra.mxu0 %v482_v48  ;;  %788 = vmatmul.mubr.msk.f32.vlgmr.msra.gmra.mxu1 %vm365_vm6, %v362_v47 }
  0x57   : > { %792 = vmatprep.subr.mxu0 %v1015_v0  ;;  %822 = vmatprep.mubr.msk.f32.mxu0 %vm1016_vm0, %v1015_v0 }
  0x58   : > { %793 = vmatpush3.msra.mxu0 %v481_v49 }
  0x59   : > { %794 = vmatprep.subr.mxu0 %v1015_v0 }
  0x5a   : > { %795 = vmatpush3.msra.mxu0 %v480_v50 }
  0x5b   : > { %796 = vmatprep.subr.mxu0 %v1015_v0 }
  0x5c   : > { %797 = vmatpush3.msra.mxu0 %v479_v51 }
  0x5d   : > { %798 = vmatprep.subr.mxu0 %v1015_v0 }
  0x5e   : > { %799 = vmatpush3.msra.mxu0 %v478_v52 }
  0x5f   : > { %800 = vmatprep.subr.mxu0 %v1015_v0 }
  0x60   : > { %801 = vmatpush3.msra.mxu0 %v477_v53 }
  0x61   : > { %802 = vmatprep.subr.mxu0 %v1015_v0 }
  0x62   : > { %803 = vmatpush3.msra.mxu0 %v476_v54 }
  0x63   : > { %804 = vmatprep.subr.mxu0 %v1015_v0 }
  0x64   : > { %805 = vmatpush3.msra.mxu0 %v475_v55 }
  0x65   : > { %806 = vmatprep.subr.mxu0 %v1015_v0 }
  0x66   : > { %807 = vmatpush3.msra.mxu0 %v474_v56 }
  0x67   : > { %808 = vmatprep.subr.mxu0 %v1015_v0 }
  0x68   : > { %809 = vmatpush3.msra.mxu0 %v473_v57 }
  0x69   : > { %810 = vmatprep.subr.mxu0 %v1015_v0 }
  0x6a   : > { %811 = vmatpush3.msra.mxu0 %v472_v59 }
  0x6b   : > { %812 = vmatprep.subr.mxu0 %v1015_v0 }
  0x6c   : > { %813 = vmatpush3.msra.mxu0 %v471_v60 }
  0x6d   : > { %814 = vmatprep.subr.mxu0 %v1015_v0 }
  0x6e   : > { %815 = vmatpush3.msra.mxu0 %v470_v62 }
  0x6f   : > { %816 = vmatprep.subr.mxu0 %v1015_v0 }
  0x70   : > { %817 = vmatpush3.msra.mxu0 %v469_v1 }
  0x71   : > { %818 = vmatprep.subr.mxu0 %v1015_v0 }
  0x72   : > { %819 = vmatpush3.msra.mxu0 %v468_v3 }
  0x73   : > { %820 = vmatprep.subr.mxu0 %v1015_v0 }
  0x74   : > { %821 = vmatpush3.msra.mxu0 %v467_v4 }
  0x75   : > { %823 = vmatmul.mubr.msk.f32.vlgmr.msra.gmra.mxu0 %vm464_vm9, %v460_v5 }
 0x115   : > { %v352_v6 = vpop.f32.mrf.mxu0 }
 0x116   : > { %v450_v7 = vpop.f32.mrf.mxu1  ;;  %v356_v11 = vadd.f32 %v655_v10, %v352_v6 }
 0x117   : > { %v754_v8 = vpop.f32.mrf.mxu0 }
 0x118   : > { %v789_v9 = vpop.f32.mrf.mxu1  ;;  %v454_v12 = vadd.f32 %v450_v7, %v356_v11 }
 0x135   : > { %v549_v13 = vpop.f32.mrf.mxu0 }
 0x136   : > { %v553_v0 = vadd.f32 %v549_v13, %v454_v12 }
 0x137   : > { %v824_v14 = vpop.f32.mrf.mxu0 }
 0x138   : > { %554 = vst [vmem:[%s232_s14] sm:$0xff] %v553_v0 }
 0x139   : > { %954 = shalt.err (!%p951_p1)
}
 0x13a   : > { %s955_s7 = scalar_lea.hbm %s1227_s23, 128  ;;  %s959_s10 = scalar_lea.hbm %s1267_s5, 256 }
 0x13b   : > { %p956_p3 = scmp.ne.s32.totalorder %s1227_s23, %s955_s7  ;;  %p960_p13 = scmp.lt.s32.totalorder %s1227_s23, %s1267_s5 }
 0x13c   : > { %p961_p7 = scmp.lt.s32.totalorder %s959_s10, %s955_s7 }
 0x13d   : > { %p957_p2 = pnand %p956_p3, %p1086_p5 }
 0x13e   : > { %p962_p6 = por %p961_p7, %p960_p13 }
 0x13f   : > { %p958_p4 = pneg %p957_p2 }
 0x141   : > { %p963_p9 = pnand %p962_p6, %p958_p4 }
 0x143   : > { %966 = shalt.err (!%p963_p9)
}
 0x144   : > { %833 = dma.vmem_to_hbm [thread:$0]  (%p1086_p5), %s570_s15, 128, %s1227_s23, %s556_s25  }
 0x145 PF: > { %p850_p10 = scmp.ge.s32.totalorder %s1009_s21, 2  ;;  %s581_s13 = sand.u32 1, %s997_s18  }
 0x146   : > { %p1277_p12 = scmp.ne.s32.totalorder %s1270_s29, 0  ;;  %s582_s14 = scalar_lea.sflag [#allocation4], %s581_s13 }
 0x148   : > { %p843_p8 = pnand %p850_p10, %p1277_p12 }
 0x14a   : > { %p844_p11 = pneg %p843_p8 }
 0x14c   : > { %992 = dma.done.wait (%p844_p11), %s582_s14, 128  }
 0x14d   : > { %994 = vsyncadd (%p844_p11), %s582_s14, 4294967168  ;;  %p17_p0 = scmp.ge.s32.totalorder %s1073_s24, 4   ;;  %s1278_s18 = smov %s1001_s19 }
 0x14e   : > { %s1279_s19 = smov %s1005_s20  ;;  %s1280_s20 = smov %s1084_s27 }
 0x14f   : > { %s1281_s21 = smov %s1073_s24  ;;  %19 = sbr.rel (!%p17_p0) target bundleno = 5 (0x5), region = 86 }
 0x154   :  { %587 = vsyncpa [#allocation3], 1 }
 0x155   :  { %589 = vsyncpa [#allocation3 + $0x1], 1 }
 0x156   :  { %590 = vsyncpa [#allocation6], 1 }
 0x157   :  { %591 = vsyncpa [#allocation4], 1 }
 0x158   :  { %593 = vsyncpa [#allocation4 + $0x1], 1 }

</bundles_post_ra>
